<compile_context>
chip_gen: v6e
topology: v6e:2x2x1
jax: 0.10.0
libtpu: 0.0.40
codegen_flags: <defaults>
</compile_context>

<pallas_src>
import functools

import jax
import jax.numpy as jnp
from jax.experimental import pallas as pl
from jax.experimental.pallas import tpu as pltpu


def _fdl_kernel(s_logits_ref, t_logits_ref, labels_ref, s_feat_ref, t_feat_ref,
                out_ref, acc_ref, *,
                alpha, temperature, feature_weight,
                inv_b, inv_n_feat, f_total, chunks_per_split, needs_mask):
    c = pl.program_id(0)      # split axis ("parallel": one sub-range per TensorCore)
    k = pl.program_id(1)      # feature-chunk axis ("arbitrary": reduction)

    B, T = s_feat_ref.shape
    n_groups = T // 128

    # ---- init per-split accumulator ---------------------------------------
    @pl.when(k == 0)
    def _():
        acc_ref[...] = jnp.zeros_like(acc_ref)

    # ---- streamed MSE partial sum (lane-wise; stays in VALU slots) ---------
    if needs_mask:
        global_chunk = c * chunks_per_split + k
        col_base = global_chunk * T
        lane_iota = jax.lax.broadcasted_iota(jnp.int32, (B, 128), 1)

    part = jnp.zeros((B, 128), jnp.float32)
    for g in range(n_groups):
        sg = s_feat_ref[:, g * 128:(g + 1) * 128].astype(jnp.float32)
        tg = t_feat_ref[:, g * 128:(g + 1) * 128].astype(jnp.float32)
        dg = sg - tg
        d2 = dg * dg
        if needs_mask:
            cols = lane_iota + (col_base + g * 128)
            d2 = jnp.where(cols < f_total, d2, 0.0)
        part = part + d2
    acc_ref[...] += part

    # ---- finalize: single cross-lane reduce + (tiny) logits terms ----------
    @pl.when(k == pl.num_programs(1) - 1)
    def _():
        mse_part = jnp.sum(acc_ref[...]) * inv_n_feat

        s = s_logits_ref[...].astype(jnp.float32)          # (B, C)
        t = t_logits_ref[...].astype(jnp.float32)          # (B, C)
        inv_T = 1.0 / temperature

        # KD: KLDiv(log_softmax(s/T), softmax(t/T)), 'batchmean', * T^2
        s_t = s * inv_T
        s_shift = s_t - jnp.max(s_t, axis=1, keepdims=True)
        s_logsm_T = s_shift - jnp.log(jnp.sum(jnp.exp(s_shift), axis=1, keepdims=True))

        t_t = t * inv_T
        t_shift = t_t - jnp.max(t_t, axis=1, keepdims=True)
        t_logsm = t_shift - jnp.log(jnp.sum(jnp.exp(t_shift), axis=1, keepdims=True))
        t_soft = jnp.exp(t_logsm)

        kd_loss = jnp.sum(t_soft * (t_logsm - s_logsm_T)) * (inv_b * temperature * temperature)

        # CE: CrossEntropyLoss(student_logits, labels), mean over batch
        s_shift2 = s - jnp.max(s, axis=1, keepdims=True)
        s_logsm = s_shift2 - jnp.log(jnp.sum(jnp.exp(s_shift2), axis=1, keepdims=True))
        labels = labels_ref[...]                            # (B, 1) int32
        onehot = jax.lax.broadcasted_iota(jnp.int32, s.shape, 1) == labels
        ce_loss = -jnp.sum(jnp.where(onehot, s_logsm, 0.0)) * inv_b

        logit_terms = alpha * kd_loss + (1.0 - alpha) * ce_loss
        # logits terms contributed by split 0 only (split 1 adds only its MSE share)
        total = feature_weight * mse_part + jnp.where(c == 0, logit_terms, 0.0)
        out_ref[...] = jnp.full(out_ref.shape, total, dtype=jnp.float32)


def feature_distillation_loss(student_logits, teacher_logits,
                              student_features, teacher_features, labels,
                              alpha=0.7, temperature=4.0, feature_weight=0.2,
                              max_tile=8192):
    B, num_classes = student_logits.shape
    # Glue: flatten NCHW features to a lane-dense (B, C*H*W) view; labels -> (B,1) int32.
    s_feat = student_features.reshape(B, -1)
    t_feat = teacher_features.reshape(B, -1)
    F = s_feat.shape[1]
    n_feat_total = B * F
    labels_2d = labels.astype(jnp.int32).reshape(B, 1)

    feat_itemsize = jnp.dtype(s_feat.dtype).itemsize

    # --- per-generation tile sizing / VMEM budgeting ---
    try:
        vmem_bytes = int(pltpu.get_tpu_info().vmem_capacity_bytes)
    except Exception:
        vmem_bytes = 64 * 1024 * 1024        # conservative (v7x per-core VMEM)
    budget = vmem_bytes // 8                 # 2 feature inputs x 2 pipeline buffers
    f_pad = ((F + 127) // 128) * 128
    tile = budget // (4 * B * feat_itemsize)
    tile = min(tile, max_tile, f_pad)
    tile = max(128, (tile // 128) * 128)

    num_chunks = pl.cdiv(F, tile)
    num_splits = 2 if num_chunks >= 2 else 1   # v7x: one chunk sub-range per TensorCore
    cps = pl.cdiv(num_chunks, num_splits)
    needs_mask = (F % tile != 0) or (num_splits * cps != num_chunks)

    kernel = functools.partial(
        _fdl_kernel,
        alpha=float(alpha), temperature=float(temperature),
        feature_weight=float(feature_weight),
        inv_b=1.0 / B, inv_n_feat=1.0 / n_feat_total,
        f_total=F, chunks_per_split=cps, needs_mask=needs_mask)

    def feat_index_map(c, k):
        # clamp so an (odd-chunk-count) overhang never indexes past the array;
        # the in-kernel column mask zeroes any duplicated / padded columns.
        return (0, jnp.minimum(c * cps + k, num_chunks - 1))

    grid_spec = pltpu.PrefetchScalarGridSpec(
        num_scalar_prefetch=0,
        grid=(num_splits, cps),
        in_specs=[
            pl.BlockSpec((B, num_classes), lambda c, k: (0, 0)),   # student logits (resident)
            pl.BlockSpec((B, num_classes), lambda c, k: (0, 0)),   # teacher logits (resident)
            pl.BlockSpec((B, 1), lambda c, k: (0, 0)),             # labels (resident)
            pl.BlockSpec((B, tile), feat_index_map),               # student features (streamed)
            pl.BlockSpec((B, tile), feat_index_map),               # teacher features (streamed)
        ],
        out_specs=pl.BlockSpec((1, 8, 128), lambda c, k: (c, 0, 0)),
        scratch_shapes=[pltpu.VMEM((B, 128), jnp.float32)],
    )

    out = pl.pallas_call(
        kernel,
        out_shape=jax.ShapeDtypeStruct((num_splits, 8, 128), jnp.float32),
        grid_spec=grid_spec,
        compiler_params=pltpu.CompilerParams(
            dimension_semantics=("parallel", "arbitrary"),
            vmem_limit_bytes=int(vmem_bytes // 4),
        ),
    )(student_logits, teacher_logits, labels_2d, s_feat, t_feat)

    # Wrapper combines the per-split partial losses.
    return jnp.sum(out[:, 0, 0])


if __name__ == "__main__":
    key = jax.random.PRNGKey(0)
    k1, k2, k3, k4, k5 = jax.random.split(key, 5)

    B, NUM_CLASSES = 8, 16
    C, H, W = 3, 16, 16          # F = 768 per example (exercises masking paths below)

    student_logits = jax.random.normal(k1, (B, NUM_CLASSES), dtype=jnp.float32)
    teacher_logits = jax.random.normal(k2, (B, NUM_CLASSES), dtype=jnp.float32)
    student_features = jax.random.normal(k3, (B, C, H, W), dtype=jnp.float32)
    teacher_features = jax.random.normal(k4, (B, C, H, W), dtype=jnp.float32)
    labels = jax.random.randint(k5, (B,), 0, NUM_CLASSES)

    # Pure-JAX reference (same math, outside Pallas)
    T_, alpha, fw = 4.0, 0.7, 0.2
    s_lsm_T = jax.nn.log_softmax(student_logits / T_, axis=1)
    t_sm_T = jax.nn.softmax(teacher_logits / T_, axis=1)
    kd_ref = jnp.sum(t_sm_T * (jnp.log(t_sm_T) - s_lsm_T)) / B * T_ * T_
    s_lsm = jax.nn.log_softmax(student_logits, axis=1)
    ce_ref = -jnp.mean(jnp.take_along_axis(s_lsm, labels[:, None], axis=1))
    mse_ref = jnp.mean((student_features - teacher_features) ** 2)
    ref = alpha * kd_ref + (1 - alpha) * ce_ref + fw * mse_ref

    # Exercise: single-tile path (8192), split + partial-last-tile mask (512),
    # and odd-chunk-count clamped-duplicate path (256).
    loss = None
    for mt in (8192, 512, 256):
        loss = feature_distillation_loss(student_logits, teacher_logits,
                                         student_features, teacher_features, labels,
                                         max_tile=mt)
        loss = jax.block_until_ready(loss)
        assert jnp.allclose(loss, ref, rtol=1e-4, atol=1e-4), (mt, loss, ref)

    print("KERNEL_OK")
</pallas_src>

<mosaic_0001>
module attributes {stable_mosaic.version = 11 : i64} {
  func.func @_fdl_kernel(%arg0: i32, %arg1: i32, %arg2: memref<8x16xf32, #tpu.memory_space<vmem>>, %arg3: memref<8x16xf32, #tpu.memory_space<vmem>>, %arg4: memref<8x1xi32, #tpu.memory_space<vmem>>, %arg5: memref<8x768xf32, #tpu.memory_space<vmem>>, %arg6: memref<8x768xf32, #tpu.memory_space<vmem>>, %arg7: memref<1x8x128xf32, #tpu.memory_space<vmem>>, %arg8: memref<8x128xf32, #tpu.memory_space<vmem>>) attributes {dimension_semantics = [#tpu.dimension_semantics<parallel>, #tpu.dimension_semantics<arbitrary>], iteration_bounds = array<i64: 1, 1>, scalar_prefetch = 0 : i64, scratch_operands = 1 : i64, tpu.core_type = #tpu.core_type<tc>, window_params = [{pipeline_mode = #tpu.pipeline_mode<synchronous>, transform_indices = @transform_0, window_bounds = array<i64: 8, 16>}, {pipeline_mode = #tpu.pipeline_mode<synchronous>, transform_indices = @transform_1, window_bounds = array<i64: 8, 16>}, {pipeline_mode = #tpu.pipeline_mode<synchronous>, transform_indices = @transform_2, window_bounds = array<i64: 8, 1>}, {transform_indices = @transform_3, window_bounds = array<i64: 8, 768>}, {transform_indices = @transform_4, window_bounds = array<i64: 8, 768>}, {transform_indices = @transform_5, window_bounds = array<i64: 1, 8, 128>}]} {
    %c0_i32 = arith.constant 0 : i32
    %0 = arith.cmpi eq, %arg1, %c0_i32 : i32
    %1 = arith.extui %0 : i1 to i32
    %c0_i32_0 = arith.constant 0 : i32
    %2 = arith.cmpi ne, %1, %c0_i32_0 : i32
    scf.if %2 {
      %cst_25 = arith.constant 0.000000e+00 : f32
      %40 = vector.broadcast %cst_25 : f32 to vector<8x128xf32>
      %c0_26 = arith.constant 0 : index
      %c0_27 = arith.constant 0 : index
      %41 = vector.load %arg8[%c0_26, %c0_27] : memref<8x128xf32, #tpu.memory_space<vmem>>, vector<8x128xf32>
      tpu.vector_store %arg8[%c0_26, %c0_27], %40 {strides = array<i32>} : memref<8x128xf32, #tpu.memory_space<vmem>>, vector<8x128xf32>,
    } else {
    }
    %cst = arith.constant 0.000000e+00 : f32
    %3 = vector.broadcast %cst : f32 to vector<8x128xf32>
    %c0 = arith.constant 0 : index
    %c0_1 = arith.constant 0 : index
    %4 = vector.load %arg5[%c0, %c0_1] : memref<8x768xf32, #tpu.memory_space<vmem>>, vector<8x128xf32>
    %c0_2 = arith.constant 0 : index
    %c0_3 = arith.constant 0 : index
    %5 = vector.load %arg6[%c0_2, %c0_3] : memref<8x768xf32, #tpu.memory_space<vmem>>, vector<8x128xf32>
    %6 = arith.subf %4, %5 : vector<8x128xf32>
    %7 = arith.mulf %6, %6 : vector<8x128xf32>
    %8 = arith.addf %3, %7 : vector<8x128xf32>
    %c0_4 = arith.constant 0 : index
    %c128 = arith.constant 128 : index
    %9 = vector.load %arg5[%c0_4, %c128] : memref<8x768xf32, #tpu.memory_space<vmem>>, vector<8x128xf32>
    %c0_5 = arith.constant 0 : index
    %c128_6 = arith.constant 128 : index
    %10 = vector.load %arg6[%c0_5, %c128_6] : memref<8x768xf32, #tpu.memory_space<vmem>>, vector<8x128xf32>
    %11 = arith.subf %9, %10 : vector<8x128xf32>
    %12 = arith.mulf %11, %11 : vector<8x128xf32>
    %13 = arith.addf %8, %12 : vector<8x128xf32>
    %c0_7 = arith.constant 0 : index
    %c256 = arith.constant 256 : index
    %14 = vector.load %arg5[%c0_7, %c256] : memref<8x768xf32, #tpu.memory_space<vmem>>, vector<8x128xf32>
    %c0_8 = arith.constant 0 : index
    %c256_9 = arith.constant 256 : index
    %15 = vector.load %arg6[%c0_8, %c256_9] : memref<8x768xf32, #tpu.memory_space<vmem>>, vector<8x128xf32>
    %16 = arith.subf %14, %15 : vector<8x128xf32>
    %17 = arith.mulf %16, %16 : vector<8x128xf32>
    %18 = arith.addf %13, %17 : vector<8x128xf32>
    %c0_10 = arith.constant 0 : index
    %c384 = arith.constant 384 : index
    %19 = vector.load %arg5[%c0_10, %c384] : memref<8x768xf32, #tpu.memory_space<vmem>>, vector<8x128xf32>
    %c0_11 = arith.constant 0 : index
    %c384_12 = arith.constant 384 : index
    %20 = vector.load %arg6[%c0_11, %c384_12] : memref<8x768xf32, #tpu.memory_space<vmem>>, vector<8x128xf32>
    %21 = arith.subf %19, %20 : vector<8x128xf32>
    %22 = arith.mulf %21, %21 : vector<8x128xf32>
    %23 = arith.addf %18, %22 : vector<8x128xf32>
    %c0_13 = arith.constant 0 : index
    %c512 = arith.constant 512 : index
    %24 = vector.load %arg5[%c0_13, %c512] : memref<8x768xf32, #tpu.memory_space<vmem>>, vector<8x128xf32>
    %c0_14 = arith.constant 0 : index
    %c512_15 = arith.constant 512 : index
    %25 = vector.load %arg6[%c0_14, %c512_15] : memref<8x768xf32, #tpu.memory_space<vmem>>, vector<8x128xf32>
    %26 = arith.subf %24, %25 : vector<8x128xf32>
    %27 = arith.mulf %26, %26 : vector<8x128xf32>
    %28 = arith.addf %23, %27 : vector<8x128xf32>
    %c0_16 = arith.constant 0 : index
    %c640 = arith.constant 640 : index
    %29 = vector.load %arg5[%c0_16, %c640] : memref<8x768xf32, #tpu.memory_space<vmem>>, vector<8x128xf32>
    %c0_17 = arith.constant 0 : index
    %c640_18 = arith.constant 640 : index
    %30 = vector.load %arg6[%c0_17, %c640_18] : memref<8x768xf32, #tpu.memory_space<vmem>>, vector<8x128xf32>
    %31 = arith.subf %29, %30 : vector<8x128xf32>
    %32 = arith.mulf %31, %31 : vector<8x128xf32>
    %33 = arith.addf %28, %32 : vector<8x128xf32>
    %c0_19 = arith.constant 0 : index
    %c0_20 = arith.constant 0 : index
    %34 = vector.load %arg8[%c0_19, %c0_20] : memref<8x128xf32, #tpu.memory_space<vmem>>, vector<8x128xf32>
    %35 = arith.addf %34, %33 : vector<8x128xf32>
    %c0_21 = arith.constant 0 : index
    %c0_22 = arith.constant 0 : index
    %36 = vector.load %arg8[%c0_21, %c0_22] : memref<8x128xf32, #tpu.memory_space<vmem>>, vector<8x128xf32>
    tpu.vector_store %arg8[%c0_21, %c0_22], %35 {strides = array<i32>} : memref<8x128xf32, #tpu.memory_space<vmem>>, vector<8x128xf32>,
    %c0_i32_23 = arith.constant 0 : i32
    %37 = arith.cmpi eq, %arg1, %c0_i32_23 : i32
    %38 = arith.extui %37 : i1 to i32
    %c0_i32_24 = arith.constant 0 : i32
    %39 = arith.cmpi ne, %38, %c0_i32_24 : i32
    scf.if %39 {
      %c0_25 = arith.constant 0 : index
      %c0_26 = arith.constant 0 : index
      %40 = vector.load %arg8[%c0_25, %c0_26] : memref<8x128xf32, #tpu.memory_space<vmem>>, vector<8x128xf32>
      %41 = vector.shape_cast %40 : vector<8x128xf32> to vector<1x8x128xf32>
      %cst_27 = arith.constant dense<0.000000e+00> : vector<1xf32>
      %42 = vector.multi_reduction <add>, %41, %cst_27 [1, 2] : vector<1x8x128xf32> to vector<1xf32>
      %43 = vector.shape_cast %42 : vector<1xf32> to vector<1x1x1xf32>
      %44 = vector.extract %43[0, 0, 0] : f32 from vector<1x1x1xf32>
      %cst_28 = arith.constant 1.62760422E-4 : f32
      %45 = arith.mulf %44, %cst_28 : f32
      %c0_29 = arith.constant 0 : index
      %c0_30 = arith.constant 0 : index
      %46 = vector.load %arg2[%c0_29, %c0_30] : memref<8x16xf32, #tpu.memory_space<vmem>>, vector<8x16xf32>
      %c0_31 = arith.constant 0 : index
      %c0_32 = arith.constant 0 : index
      %47 = vector.load %arg3[%c0_31, %c0_32] : memref<8x16xf32, #tpu.memory_space<vmem>>, vector<8x16xf32>
      %cst_33 = arith.constant 2.500000e-01 : f32
      %48 = vector.broadcast %cst_33 : f32 to vector<8x16xf32>
      %49 = arith.mulf %46, %48 : vector<8x16xf32>
      %cst_34 = arith.constant dense<0xFF800000> : vector<8xf32>
      %50 = vector.multi_reduction <maximumf>, %49, %cst_34 [1] : vector<8x16xf32> to vector<8xf32>
      %51 = vector.shape_cast %50 : vector<8xf32> to vector<8x1xf32>
      %52 = vector.broadcast %51 : vector<8x1xf32> to vector<8x16xf32>
      %53 = arith.subf %49, %52 : vector<8x16xf32>
      %54 = math.exp %53 : vector<8x16xf32>
      %cst_35 = arith.constant dense<0.000000e+00> : vector<8xf32>
      %55 = vector.multi_reduction <add>, %54, %cst_35 [1] : vector<8x16xf32> to vector<8xf32>
      %56 = vector.shape_cast %55 : vector<8xf32> to vector<8x1xf32>
      %57 = math.log %56 : vector<8x1xf32>
      %58 = vector.broadcast %57 : vector<8x1xf32> to vector<8x16xf32>
      %59 = arith.subf %53, %58 : vector<8x16xf32>
      %cst_36 = arith.constant 2.500000e-01 : f32
      %60 = vector.broadcast %cst_36 : f32 to vector<8x16xf32>
      %61 = arith.mulf %47, %60 : vector<8x16xf32>
      %cst_37 = arith.constant dense<0xFF800000> : vector<8xf32>
      %62 = vector.multi_reduction <maximumf>, %61, %cst_37 [1] : vector<8x16xf32> to vector<8xf32>
      %63 = vector.shape_cast %62 : vector<8xf32> to vector<8x1xf32>
      %64 = vector.broadcast %63 : vector<8x1xf32> to vector<8x16xf32>
      %65 = arith.subf %61, %64 : vector<8x16xf32>
      %66 = math.exp %65 : vector<8x16xf32>
      %cst_38 = arith.constant dense<0.000000e+00> : vector<8xf32>
      %67 = vector.multi_reduction <add>, %66, %cst_38 [1] : vector<8x16xf32> to vector<8xf32>
      %68 = vector.shape_cast %67 : vector<8xf32> to vector<8x1xf32>
      %69 = math.log %68 : vector<8x1xf32>
      %70 = vector.broadcast %69 : vector<8x1xf32> to vector<8x16xf32>
      %71 = arith.subf %65, %70 : vector<8x16xf32>
      %72 = math.exp %71 : vector<8x16xf32>
      %73 = arith.subf %71, %59 : vector<8x16xf32>
      %74 = arith.mulf %72, %73 : vector<8x16xf32>
      %75 = vector.shape_cast %74 : vector<8x16xf32> to vector<1x8x16xf32>
      %cst_39 = arith.constant dense<0.000000e+00> : vector<1xf32>
      %76 = vector.multi_reduction <add>, %75, %cst_39 [1, 2] : vector<1x8x16xf32> to vector<1xf32>
      %77 = vector.shape_cast %76 : vector<1xf32> to vector<1x1x1xf32>
      %78 = vector.extract %77[0, 0, 0] : f32 from vector<1x1x1xf32>
      %cst_40 = arith.constant 2.000000e+00 : f32
      %79 = arith.mulf %78, %cst_40 : f32
      %cst_41 = arith.constant dense<0xFF800000> : vector<8xf32>
      %80 = vector.multi_reduction <maximumf>, %46, %cst_41 [1] : vector<8x16xf32> to vector<8xf32>
      %81 = vector.shape_cast %80 : vector<8xf32> to vector<8x1xf32>
      %82 = vector.broadcast %81 : vector<8x1xf32> to vector<8x16xf32>
      %83 = arith.subf %46, %82 : vector<8x16xf32>
      %84 = math.exp %83 : vector<8x16xf32>
      %cst_42 = arith.constant dense<0.000000e+00> : vector<8xf32>
      %85 = vector.multi_reduction <add>, %84, %cst_42 [1] : vector<8x16xf32> to vector<8xf32>
      %86 = vector.shape_cast %85 : vector<8xf32> to vector<8x1xf32>
      %87 = math.log %86 : vector<8x1xf32>
      %88 = vector.broadcast %87 : vector<8x1xf32> to vector<8x16xf32>
      %89 = arith.subf %83, %88 : vector<8x16xf32>
      %c0_43 = arith.constant 0 : index
      %c0_44 = arith.constant 0 : index
      %90 = vector.load %arg4[%c0_43, %c0_44] : memref<8x1xi32, #tpu.memory_space<vmem>>, vector<8x1xi32>
      %91 = tpu.iota {dimensions = array<i32: 1>} : vector<8x16xi32>
      %92 = vector.broadcast %90 : vector<8x1xi32> to vector<8x16xi32>
      %93 = arith.cmpi eq, %91, %92 : vector<8x16xi32>
      %cst_45 = arith.constant 0.000000e+00 : f32
      %94 = vector.broadcast %cst_45 : f32 to vector<8x16xf32>
      %95 = arith.select %93, %89, %94 : vector<8x16xi1>, vector<8x16xf32>
      %96 = vector.shape_cast %95 : vector<8x16xf32> to vector<1x8x16xf32>
      %cst_46 = arith.constant dense<0.000000e+00> : vector<1xf32>
      %97 = vector.multi_reduction <add>, %96, %cst_46 [1, 2] : vector<1x8x16xf32> to vector<1xf32>
      %98 = vector.shape_cast %97 : vector<1xf32> to vector<1x1x1xf32>
      %99 = vector.extract %98[0, 0, 0] : f32 from vector<1x1x1xf32>
      %cst_47 = arith.constant 0.000000e+00 : f32
      %100 = arith.subf %cst_47, %99 : f32
      %cst_48 = arith.constant 1.250000e-01 : f32
      %101 = arith.mulf %100, %cst_48 : f32
      %cst_49 = arith.constant 0.699999988 : f32
      %102 = arith.mulf %cst_49, %79 : f32
      %cst_50 = arith.constant 3.000000e-01 : f32
      %103 = arith.mulf %cst_50, %101 : f32
      %104 = arith.addf %102, %103 : f32
      %cst_51 = arith.constant 2.000000e-01 : f32
      %105 = arith.mulf %cst_51, %45 : f32
      %c0_i32_52 = arith.constant 0 : i32
      %106 = arith.cmpi eq, %arg0, %c0_i32_52 : i32
      %cst_53 = arith.constant 0.000000e+00 : f32
      %107 = arith.select %106, %104, %cst_53 : f32
      %108 = arith.addf %105, %107 : f32
      %109 = vector.broadcast %108 : f32 to vector<1x8x128xf32>
      %c0_54 = arith.constant 0 : index
      %c0_55 = arith.constant 0 : index
      %c0_56 = arith.constant 0 : index
      %110 = vector.load %arg7[%c0_54, %c0_55, %c0_56] : memref<1x8x128xf32, #tpu.memory_space<vmem>>, vector<1x8x128xf32>
      tpu.vector_store %arg7[%c0_54, %c0_55, %c0_56], %109 {strides = array<i32>} : memref<1x8x128xf32, #tpu.memory_space<vmem>>, vector<1x8x128xf32>,
    } else {
    }
    return
  }
  func.func @transform_0(%arg0: i32, %arg1: i32) -> (i32, i32) {
    %c0_i32 = arith.constant 0 : i32
    %c0_i32_0 = arith.constant 0 : i32
    %c0_i32_1 = arith.constant 0 : i32
    return %c0_i32, %c0_i32_0 : i32, i32
  }
  func.func @transform_1(%arg0: i32, %arg1: i32) -> (i32, i32) {
    %c0_i32 = arith.constant 0 : i32
    %c0_i32_0 = arith.constant 0 : i32
    %c0_i32_1 = arith.constant 0 : i32
    return %c0_i32, %c0_i32_0 : i32, i32
  }
  func.func @transform_2(%arg0: i32, %arg1: i32) -> (i32, i32) {
    %c0_i32 = arith.constant 0 : i32
    %c0_i32_0 = arith.constant 0 : i32
    %c0_i32_1 = arith.constant 0 : i32
    return %c0_i32, %c0_i32_0 : i32, i32
  }
  func.func @transform_3(%arg0: i32, %arg1: i32) -> (i32, i32) {
    %c1_i32 = arith.constant 1 : i32
    %0 = arith.muli %arg0, %c1_i32 : i32
    %1 = arith.addi %0, %arg1 : i32
    %c0_i32 = arith.constant 0 : i32
    %2 = arith.minsi %1, %c0_i32 : i32
    %c0_i32_0 = arith.constant 0 : i32
    %c0_i32_1 = arith.constant 0 : i32
    return %c0_i32_0, %2 : i32, i32
  }
  func.func @transform_4(%arg0: i32, %arg1: i32) -> (i32, i32) {
    %c1_i32 = arith.constant 1 : i32
    %0 = arith.muli %arg0, %c1_i32 : i32
    %1 = arith.addi %0, %arg1 : i32
    %c0_i32 = arith.constant 0 : i32
    %2 = arith.minsi %1, %c0_i32 : i32
    %c0_i32_0 = arith.constant 0 : i32
    %c0_i32_1 = arith.constant 0 : i32
    return %c0_i32_0, %2 : i32, i32
  }
  func.func @transform_5(%arg0: i32, %arg1: i32) -> (i32, i32, i32) {
    %c0_i32 = arith.constant 0 : i32
    %c0_i32_0 = arith.constant 0 : i32
    %c0_i32_1 = arith.constant 0 : i32
    return %arg0, %c0_i32, %c0_i32_0 : i32, i32, i32
  }
}

</mosaic_0001>

<bundles_post_ra>
// kernel: tpu_custom_call.1
= control target key start
LH: loop header
LB: loop body
LE: loop exit
PB: predicated region body
PF: predicated region fallthrough
CT: control target
= control target key end

     0   :  { %10 = vsyncpa [#allocation4], 0  ;;  %s414_s0 = inlined_call_operand.vmem [shape: f32[8,16], index: 0, kind: input, shape index: {}]   ;;  %s415_s1 = inlined_call_operand.hbm [shape: f32[8,16], index: 1, kind: input, shape index: {}]   ;;  %s416_s2 = inlined_call_operand.vmem [shape: s32[8,1], index: 2, kind: input, shape index: {}]   ;;  %s417_s3 = inlined_call_operand.hbm [shape: f32[8,768], index: 3, kind: input, shape index: {}]   ;;  %s418_s4 = inlined_call_operand.hbm [shape: f32[8,768], index: 4, kind: input, shape index: {}]   ;;  %s419_s5 = inlined_call_operand.hbm [shape: f32[1,8,128], index: 5, kind: output, shape index: {}]  }
   0x1   :  { %11 = vsyncpa [#allocation7], 0 }
   0x2   :  { %12 = vsyncpa [#allocation5], 0  ;;  %s345_s18 = smov [#allocation6]   ;;  %s346_s20 = smov [#allocation3]  }
   0x3   :  { %s39_s19 = sshll.u32 %s345_s18, 4  ;;  %s21_s21 = sshll.u32 %s346_s20, 4  ;;  %s40_s19 = int_to_ptr.vmem [resolvable:$true] %s39_s19  ;;  %s22_s21 = int_to_ptr.vmem [resolvable:$true] %s21_s21 }
   0x4   :  { %s267_s22 = scalar_lea.vmem %s40_s19, 768  ;;  %p272_p1 = scmp.lt.s32.totalorder %s40_s19, %s40_s19 }
   0x5   :  { %p268_p0 = scmp.ne.s32.totalorder %s40_s19, %s267_s22  ;;  %p273_p2 = scmp.lt.s32.totalorder %s267_s22, %s267_s22 }
   0x7   :  { %p274_p3 = por %p273_p2, %p272_p1 }
   0x9   :  { %p275_p4 = pnand %p274_p3, %p268_p0 }
   0xb   :  { %278 = shalt.err (!%p275_p4)
}
   0xc   :  { %42 = dma.hbm_to_vmem [thread:$0]  %s417_s3, 768, %s40_s19, [#allocation7]  }
   0xd   :  { %s287_s25 = scalar_lea.vmem %s22_s21, 128  ;;  %p292_p6 = scmp.lt.s32.totalorder %s22_s21, %s22_s21 }
   0xe   :  { %p288_p5 = scmp.ne.s32.totalorder %s22_s21, %s287_s25  ;;  %p293_p7 = scmp.lt.s32.totalorder %s287_s25, %s287_s25 }
  0x10   :  { %p294_p8 = por %p293_p7, %p292_p6 }
  0x12   :  { %p295_p9 = pnand %p294_p8, %p288_p5 }
  0x14   :  { %298 = shalt.err (!%p295_p9)
}
  0x15   :  { %24 = dma.hbm_to_vmem [thread:$0]  %s415_s1, 128, %s22_s21, [#allocation4]  }
  0x16   :  { %s347_s28 = smov [#allocation8]  }
  0x17   :  { %s55_s29 = sshll.u32 %s347_s28, 4  ;;  %s56_s29 = int_to_ptr.vmem [resolvable:$true] %s55_s29 }
  0x18   :  { %s307_s30 = scalar_lea.vmem %s56_s29, 768  ;;  %p312_p11 = scmp.lt.s32.totalorder %s56_s29, %s56_s29 }
  0x19   :  { %p308_p10 = scmp.ne.s32.totalorder %s56_s29, %s307_s30  ;;  %p313_p12 = scmp.lt.s32.totalorder %s307_s30, %s307_s30 }
  0x1b   :  { %p314_p13 = por %p313_p12, %p312_p11 }
  0x1d   :  { %p315_p0 = pnand %p314_p13, %p308_p10 }
  0x1f   :  { %318 = shalt.err (!%p315_p0)
}
  0x20   :  { %58 = dma.hbm_to_vmem [thread:$0]  %s418_s4, 768, %s56_s29, [#allocation7]  }
  0x21   :  { %339 = dma.done.wait [#allocation4], 128  }
  0x22   :  { %340 = vsyncadd [#allocation4], 4294967168 }
  0x23   :  { %341 = dma.done.wait [#allocation7], 1536  }
  0x24   :  { %342 = vsyncadd [#allocation7], 4294965760  ;;  %v129_v0 = vld [vmem:[#allocation3] sm:$0xff]  ;;  %vm131_vm0 = vcmask 130048   ;;  %v348_v7 = vmov 0   ;;  %v81_v24 = vld [vmem:[#allocation6] sm:$0xff]  ;;  %v185_v63 = vlaneseq }
  0x25   :  { %v128_v1 = vld [vmem:[%s414_s0] sm:$0xff]  ;;  %v144_v2 = vmul.f32 0.25, %v129_v0  ;;  %244 = vset.pattern.permute.xlu0 %v348_v7  ;;  %v82_v25 = vld [vmem:[#allocation8] sm:$0xff]  ;;  %v86_v26 = vld [vmem:[#allocation6 + $0x8] sm:$0xff]  ;;  %s349_s18 = smov [#allocation9]  }
  0x26   :  { %v172_v3 = vsel %vm131_vm0, %v128_v1, -inf  ;;  %v130_v4 = vmul.f32 0.25, %v128_v1  ;;  %v184_v23 = vld [vmem:[%s416_s2] sm:$0xff]  ;;  %v83_v27 = vsub.f32 %v81_v24, %v82_v25  ;;  %v91_v30 = vld [vmem:[#allocation6 + $0x10] sm:$0xff]  ;;  %v92_v31 = vld [vmem:[#allocation8 + $0x10] sm:$0xff]  ;;  %s219_s19 = sshll.u32 %s349_s18, 4  ;;  %s220_s19 = int_to_ptr.vmem [resolvable:$true] %s219_s19 }
  0x27   :  { %173 = vmax.xlane.f32.xlu1 %v172_v3  ;;  %v145_v5 = vsel %vm131_vm0, %v144_v2, -inf  ;;  %v87_v28 = vld [vmem:[#allocation8 + $0x8] sm:$0xff]  ;;  %v93_v33 = vsub.f32 %v91_v30, %v92_v31  ;;  %v97_v36 = vld [vmem:[#allocation8 + $0x18] sm:$0xff]  ;;  %v101_v40 = vld [vmem:[#allocation6 + $0x20] sm:$0xff]  ;;  %s319_s21 = scalar_lea.vmem %s220_s19, 128  ;;  %p324_p2 = scmp.lt.s32.totalorder %s220_s19, %s220_s19 }
  0x28   :  { %146 = vmax.xlane.f32.xlu0 %v145_v5  ;;  %v132_v6 = vsel %vm131_vm0, %v130_v4, -inf  ;;  %v88_v29 = vsub.f32 %v86_v26, %v87_v28  ;;  %v84_v32 = vmul.f32 %v83_v27, %v83_v27  ;;  %v96_v35 = vld [vmem:[#allocation6 + $0x18] sm:$0xff]  ;;  %v102_v41 = vld [vmem:[#allocation8 + $0x20] sm:$0xff]  ;;  %v106_v45 = vld [vmem:[#allocation6 + $0x28] sm:$0xff]  ;;  %p320_p1 = scmp.ne.s32.totalorder %s220_s19, %s319_s21  ;;  %p325_p3 = scmp.lt.s32.totalorder %s319_s21, %s319_s21 }
  0x29   :  { %v94_v37 = vmul.f32 %v93_v33, %v93_v33  ;;  %v98_v38 = vsub.f32 %v96_v35, %v97_v36  ;;  %v103_v43 = vsub.f32 %v101_v40, %v102_v41  ;;  %v107_v46 = vld [vmem:[#allocation8 + $0x28] sm:$0xff] }
  0x2a   :  { %v89_v34 = vmul.f32 %v88_v29, %v88_v29  ;;  %v108_v48 = vsub.f32 %v106_v45, %v107_v46  ;;  %p326_p4 = por %p325_p3, %p324_p2 }
  0x2b   :  { %v99_v42 = vmul.f32 %v98_v38, %v98_v38  ;;  %v104_v47 = vmul.f32 %v103_v43, %v103_v43 }
  0x2c   :  { %133 = vmax.xlane.f32.xlu0 %v132_v6  ;;  %v90_v39 = vadd.f32 %v89_v34, %v84_v32  ;;  %v109_v50 = vmul.f32 %v108_v48, %v108_v48  ;;  %p327_p5 = pnand %p326_p4, %p320_p1 }
  0x2e   :  { %v95_v44 = vadd.f32 %v94_v37, %v90_v39 }
  0x30   :  { %v100_v49 = vadd.f32 %v99_v42, %v95_v44 }
  0x32   :  { %v105_v51 = vadd.f32 %v104_v47, %v100_v49 }
  0x34   :  { %v110_v52 = vadd.f32 %v109_v50, %v105_v51 }
  0xb0   :  { %v174_v8 = vpop.xlane.xlu1 %173 }
  0xb1   :  { %v395_v9 = vsub.f32 %v128_v1, %v174_v8  ;;  %v147_v10 = vpop.xlane.xlu0 %146 }
  0xb2   :  { %v148_v11 = vsub.f32 %v144_v2, %v147_v10  ;;  %v186_v2 = vand.u32 127, %v185_v63 }
  0xb3   :  { %v176_v12 = vmul.f32 1.442695, %v395_v9 }
  0xb4   :  { %v149_v13 = vmul.f32 1.442695, %v148_v11 }
  0xb5   :  { %245 = vpow2.f32 %v176_v12  ;;  %v134_v14 = vpop.xlane.xlu0 %133 }
  0xb6   :  { %247 = vpow2.f32 %v149_v13  ;;  %v398_v15 = vsub.f32 %v130_v4, %v134_v14 }
  0xb8   :  { %v136_v16 = vmul.f32 1.442695, %v398_v15 }
  0xba   :  { %249 = vpow2.f32 %v136_v16 }
  0xc2   :  { %v246_v17 = vpop.eup %245 }
  0xc3   :  { %v248_v18 = vpop.eup %247  ;;  %v178_v20 = vsel %vm131_vm0, %v246_v17, 0.0 }
  0xc4   :  { %v151_v19 = vsel %vm131_vm0, %v248_v18, 0.0 }
  0xc5   :  { %152 = vadd.xlane.f32.xlu1 %v151_v19 }
  0xc7   :  { %v250_v21 = vpop.eup %249 }
  0xc8   :  { %v138_v22 = vsel %vm131_vm0, %v250_v21, 0.0 }
  0xc9   :  { %179 = vadd.xlane.f32.xlu1 %v178_v20  ;;  %139 = vadd.xlane.f32.xlu0 %v138_v22 }
  0xcd   :  { %118 = vadd.xlane.f32.xlu1 %v110_v52 }
  0xdf   :  { %188 = vperm.xlu0 %244, %v184_v23  }
 0x14e   :  { %v153_v53 = vpop.xlane.xlu1 %152 }
 0x14f   :  { %251 = vlog2.f32 %v153_v53 }
 0x152   :  { %v140_v54 = vpop.xlane.xlu0 %139  ;;  %v180_v55 = vpop.xlane.xlu1 %179 }
 0x153   :  { %253 = vlog2.f32 %v140_v54 }
 0x154   :  { %255 = vlog2.f32 %v180_v55 }
 0x15a   :  { %v189_v3 = vpop.permute.xlu0 %188 }
 0x15b   :  { %vm190_vm1 = vcmp.eq.s32.totalorder %v186_v2, %v189_v3 }
 0x15c   :  { %v252_v56 = vpop.eup %251 }
 0x15d   :  { %v155_v57 = vmul.f32 0.6931472, %v252_v56 }
 0x15f   :  { %v156_v58 = vsub.f32 %v148_v11, %v155_v57  ;;  %v119_v11 = vpop.xlane.xlu1 %118 }
 0x160   :  { %v254_v60 = vpop.eup %253  ;;  %v120_v12 = vrot.slane %v119_v11, 4 }
 0x161   :  { %v157_v59 = vmul.f32 1.442695, %v156_v58  ;;  %v142_v61 = vmul.f32 0.6931472, %v254_v60  ;;  %v256_v62 = vpop.eup %255 }
 0x162   :  { %v182_v1 = vmul.f32 0.6931472, %v256_v62  ;;  %v121_v14 = vadd.f32 %v120_v12, %v119_v11 }
 0x163   :  { %257 = vpow2.f32 %v157_v59  ;;  %v143_v0 = vsub.f32 %v398_v15, %v142_v61 }
 0x164   :  { %v183_v6 = vsub.f32 %v395_v9, %v182_v1  ;;  %v122_v15 = vrot.slane %v121_v14, 2 }
 0x165   :  { %v159_v4 = vsub.f32 %v156_v58, %v143_v0 }
 0x166   :  { %v191_v10 = vsel %vm190_vm1, %v183_v6, 0.0  ;;  %v123_v16 = vadd.f32 %v122_v15, %v121_v14 }
 0x167   :  { %v192_v13 = vsel %vm131_vm0, %v191_v10, 0.0 }
 0x168   :  { %v124_v17 = vrot.slane %v123_v16, 1 }
 0x16a   :  { %v125_v18 = vadd.f32 %v124_v17, %v123_v16 }
 0x16c   :  { %233 = vpush %v125_v18 }
 0x170   :  { %v258_v5 = vpop.eup %257 }
 0x171   :  { %v160_v7 = vmul.f32 %v258_v5, %v159_v4 }
 0x173   :  { %v161_v8 = vsel %vm131_vm0, %v160_v7, 0.0 }
 0x174   :  { %162 = vadd.xlane.f32.xlu1 %v161_v8 }
 0x178   :  { %193 = vadd.xlane.f32.xlu1 %v192_v13 }
 0x19d   :  { %s234_s2 = spop %233 }
 0x19e   :  { %s127_s12 = smul.f32 0.00016276042, %s234_s2 }
 0x1a0   :  { %s207_s16 = smul.f32 0.2, %s127_s12 }
 0x1fd   :  { %v163_v19 = vpop.xlane.xlu1 %162 }
 0x1fe   :  { %v164_v20 = vrot.slane %v163_v19, 4 }
 0x200   :  { %v165_v9 = vadd.f32 %v164_v20, %v163_v19 }
 0x201   :  { %v194_v21 = vpop.xlane.xlu1 %193 }
 0x202   :  { %v166_v22 = vrot.slane %v165_v9, 2  ;;  %v195_v23 = vrot.slane %v194_v21, 4 }
 0x204   :  { %v196_v24 = vadd.f32 %v195_v23, %v194_v21  ;;  %v167_v25 = vadd.f32 %v166_v22, %v165_v9 }
 0x206   :  { %v197_v26 = vrot.slane %v196_v24, 2  ;;  %v168_v27 = vrot.slane %v167_v25, 1 }
 0x208   :  { %v198_v28 = vadd.f32 %v197_v26, %v196_v24  ;;  %v169_v29 = vadd.f32 %v168_v27, %v167_v25 }
 0x20a   :  { %235 = vpush %v169_v29  ;;  %v199_v30 = vrot.slane %v198_v28, 1 }
 0x20c   :  { %v200_v31 = vadd.f32 %v199_v30, %v198_v28 }
 0x20e   :  { %237 = vpush %v200_v31 }
 0x23b   :  { %s236_s8 = spop %235 }
 0x23c   :  { %s171_s9 = smul.f32 2.0, %s236_s8 }
 0x23e   :  { %s204_s14 = smul.f32 0.7, %s171_s9 }
 0x23f   :  { %s238_s10 = spop %237 }
 0x240   :  { %s202_s11 = ssub.f32 0.0, %s238_s10 }
 0x242   :  { %s203_s13 = smul.f32 0.125, %s202_s11 }
 0x244   :  { %s205_s15 = smul.f32 0.3, %s203_s13 }
 0x246   :  { %s206_s17 = sadd.f32 %s205_s15, %s204_s14 }
 0x248   :  { %s210_s20 = sadd.f32 %s207_s16, %s206_s17 }
 0x24a   :  { %v211_v32 = vstv %s210_s20 }
 0x24b   :  { %212 = vst [vmem:[#allocation9] sm:$0xff] %v211_v32 }
 0x24c   :  { %330 = shalt.err (!%p327_p5)
}
 0x24d   :  { %222 = dma.vmem_to_hbm [thread:$0]  %s220_s19, 128, %s419_s5, [#allocation5]  }
 0x24e   :  { %343 = dma.done.wait [#allocation5], 128  }
 0x24f   :  { %344 = vsyncadd [#allocation5], 4294967168 }
 0x250   :  { %226 = vsyncpa [#allocation4], 1 }
 0x251   :  { %227 = vsyncpa [#allocation7], 1 }
 0x252   :  { %228 = vsyncpa [#allocation5], 1 }

</bundles_post_ra>
